<compile_context>
chip_gen: v5e
topology: v5e:2x2
jax: 0.10.0
libtpu: 0.0.40
codegen_flags: <defaults>
</compile_context>

<pallas_src>
import math

import jax
import jax.numpy as jnp
from jax.experimental import pallas as pl
from jax.experimental.pallas import tpu as pltpu


def ph_embd_kernel(idx_ref, tab_ref, pe_ref, o_ref):
    """One grid step: the (1, tile_t, D) output block for (time-tile t, batch b).

    idx_ref : (1, 4, tile_t) int32 -- rows are [diao, x, pith, speak].
    tab_ref : (4V, D) f32 -- stacked [diaoemb; phemb; pith_emb; speak_emb].
    pe_ref  : (tile_t, D) f32 -- PE slice for this time tile (shared over batch).
    o_ref   : (1, tile_t, D) f32.

    Gather is a single one-hot matmul over the stacked (4V, D) table:
      rows [0,  V)  -> diaoemb   (indexed by diao)
      rows [V, 2V)  -> phemb     (indexed by x)
      rows [2V,3V)  -> pith_emb  (indexed by pith)
      rows [3V,4V)  -> speak_emb (indexed by speak)
    The contraction over 4V sums the four lookups inside the MXU accumulator.
    """
    v4 = tab_ref.shape[0]
    v = v4 // 4
    tile_t = o_ref.shape[1]

    idx = idx_ref[0]                 # (4, tile_t) int32
    diao_i = idx[0:1]                # each (1, tile_t)
    x_i = idx[1:2]
    pith_i = idx[2:3]
    speak_i = idx[3:4]

    # Stacked-vocab row ids and per-group index selection (cmp/select only,
    # no integer division).
    row = jax.lax.broadcasted_iota(jnp.int32, (v4, tile_t), 0)
    g1 = row >= v
    g2 = row >= 2 * v
    g3 = row >= 3 * v
    sel = jnp.where(g3, speak_i, jnp.where(g2, pith_i, jnp.where(g1, x_i, diao_i)))
    shift = (g1.astype(jnp.int32) + g2.astype(jnp.int32) + g3.astype(jnp.int32)) * v
    # NOTE: an index outside [0, V) silently selects an all-zero row, whereas
    # PyTorch nn.Embedding would raise.
    onehot = (sel + shift == row).astype(jnp.float32)          # (4V, tile_t)

    # One MXU contraction over the stacked vocab -> (tile_t, D).  The one-hot
    # stays in the (sublane=4V, lane=tile_t) orientation (~24 vregs at
    # tile_t=1024) and is contracted on dim 0.  precision=HIGHEST keeps the
    # f32 table exact on the MXU.
    gathered = jax.lax.dot_general(
        onehot, tab_ref[...],
        dimension_numbers=(((0,), (0,)), ((), ())),
        precision=jax.lax.Precision.HIGHEST,
        preferred_element_type=jnp.float32)

    # + positional encoding (broadcast over batch via the shared PE tile).
    o_ref[0, :, :] = gathered + pe_ref[...]


def ph_embd_forward(x, diao, pith, speak, params, pe_table, offset=0, tile_t=None):
    B, T = x.shape
    V, D = params["phemb"].shape
    max_len = pe_table.shape[0]
    # PyTorch asserts `offset + T < max_len` (off by one); slicing only needs <=.
    assert offset + T <= max_len, (
        f"offset: {offset} + T: {T} is larger than the max_len: {max_len}")

    # Stack the four embedding tables once, outside the kernel: (4V, D).
    table = jnp.concatenate(
        [params["diaoemb"], params["phemb"], params["pith_emb"], params["speak_emb"]],
        axis=0).astype(jnp.float32)

    # PE slice -- wrapper glue, same as self.pe[:, offset:offset+T].
    pe_slice = jax.lax.dynamic_slice(pe_table, (offset, 0), (T, D)).astype(jnp.float32)

    # Lane-dense output: pad d_model to a multiple of 128 (no-op at D=128).
    d_pad = max(128, ((D + 127) // 128) * 128)
    if d_pad != D:
        table = jnp.pad(table, ((0, 0), (0, d_pad - D)))
        pe_slice = jnp.pad(pe_slice, ((0, 0), (0, d_pad - D)))

    # Time tile: full T for T <= 1024, else 1024-row tiles (amortizes the
    # ~0.35 us per-step overhead; per-step VMEM is well under limits on all
    # of v5e/v6e/v7x).
    if tile_t is None:
        tile_t = T if T <= 1024 else 1024
    assert tile_t == T or tile_t % 128 == 0, (
        "tile_t must equal T or be a multiple of 128")
    nt = pl.cdiv(T, tile_t)

    # Pack the four (B, T) index tensors into one (B, 4, T) array so each grid
    # step issues a single small index DMA instead of four.
    idx = jnp.stack([diao, x, pith, speak], axis=1).astype(jnp.int32)

    out = pl.pallas_call(
        ph_embd_kernel,
        out_shape=jax.ShapeDtypeStruct((B, T, d_pad), jnp.float32),
        # Batch innermost: the PE block index (t, 0) is constant across
        # consecutive b steps, so Pallas fetches each PE tile once per core
        # instead of B times.
        grid=(nt, B),
        in_specs=[
            pl.BlockSpec((1, 4, tile_t), lambda t, b: (b, 0, t)),   # packed indices
            pl.BlockSpec((4 * V, d_pad), lambda t, b: (0, 0)),      # stacked tables (resident)
            pl.BlockSpec((tile_t, d_pad), lambda t, b: (t, 0)),     # PE tile (dedup'd over b)
        ],
        out_specs=pl.BlockSpec((1, tile_t, d_pad), lambda t, b: (b, t, 0)),
        compiler_params=pltpu.CompilerParams(
            dimension_semantics=("parallel", "parallel"),
            vmem_limit_bytes=32 * 1024 * 1024),
    )(idx, table, pe_slice)

    return out if d_pad == D else out[..., :D]


def make_params(key, d_model, vocab=5):
    """nn.Embedding(5, d_model, padding_idx=0) x4: N(0,1) init, row 0 zeroed."""
    keys = jax.random.split(key, 4)

    def emb(k):
        w = jax.random.normal(k, (vocab, d_model), dtype=jnp.float32)
        return w.at[0].set(0.0)  # padding_idx=0 (forward-equivalent)

    return {
        "diaoemb": emb(keys[0]),
        "phemb": emb(keys[1]),
        "pith_emb": emb(keys[2]),
        "speak_emb": emb(keys[3]),
    }


def make_pe_table(max_len, d_model):
    """Sinusoidal table, identical to PositionalEncoding.__init__ (d_model even)."""
    position = jnp.arange(max_len, dtype=jnp.float32)[:, None]
    div_term = jnp.exp(jnp.arange(0, d_model, 2, dtype=jnp.float32)
                       * (-(math.log(10000.0) / d_model)))
    pe = jnp.zeros((max_len, d_model), dtype=jnp.float32)
    pe = pe.at[:, 0::2].set(jnp.sin(position * div_term))
    pe = pe.at[:, 1::2].set(jnp.cos(position * div_term))
    return pe


def ref_forward(x, diao, pith, speak, params, pe_table, offset=0):
    """Plain-JAX reference for correctness checking."""
    T = x.shape[1]
    pe_slice = pe_table[offset:offset + T]
    return (params["diaoemb"][diao] + params["phemb"][x] + pe_slice[None]
            + params["pith_emb"][pith] + params["speak_emb"][speak])


if __name__ == "__main__":
    # Small shapes; d_model=128 keeps the output last dim lane-dense.
    B, T, D, V, MAX_LEN = 2, 16, 128, 5, 5000

    key = jax.random.PRNGKey(0)
    kp, kx, kd, kpi, ks = jax.random.split(key, 5)

    params = make_params(kp, D, V)
    pe_table = make_pe_table(MAX_LEN, D)

    x = jax.random.randint(kx, (B, T), 0, V, dtype=jnp.int32)
    diao = jax.random.randint(kd, (B, T), 0, V, dtype=jnp.int32)
    pith = jax.random.randint(kpi, (B, T), 0, V, dtype=jnp.int32)
    speak = jax.random.randint(ks, (B, T), 0, V, dtype=jnp.int32)

    out = ph_embd_forward(x, diao, pith, speak, params, pe_table)
    out = jax.block_until_ready(out)
    ref = ref_forward(x, diao, pith, speak, params, pe_table)
    assert out.shape == (B, T, D), out.shape
    assert jnp.allclose(out, ref, atol=1e-5, rtol=1e-5), "mismatch vs reference"

    # Second check: multi-tile + ragged T (exercises PE dedup across the inner
    # batch axis, the masked-writeback tail, and a nonzero offset).
    B2, T2 = 3, 200
    k2 = jax.random.split(key, 9)
    x2 = jax.random.randint(k2[5], (B2, T2), 0, V, dtype=jnp.int32)
    diao2 = jax.random.randint(k2[6], (B2, T2), 0, V, dtype=jnp.int32)
    pith2 = jax.random.randint(k2[7], (B2, T2), 0, V, dtype=jnp.int32)
    speak2 = jax.random.randint(k2[8], (B2, T2), 0, V, dtype=jnp.int32)

    out2 = ph_embd_forward(x2, diao2, pith2, speak2, params, pe_table,
                           offset=7, tile_t=128)
    out2 = jax.block_until_ready(out2)
    ref2 = ref_forward(x2, diao2, pith2, speak2, params, pe_table, offset=7)
    assert out2.shape == (B2, T2, D), out2.shape
    assert jnp.allclose(out2, ref2, atol=1e-5, rtol=1e-5), "mismatch vs reference (ragged)"

    print("KERNEL_OK")
</pallas_src>

<mosaic_0001>
module attributes {stable_mosaic.version = 11 : i64} {
  func.func @ph_embd_kernel(%arg0: i32, %arg1: i32, %arg2: memref<1x4x16xi32, #tpu.memory_space<vmem>>, %arg3: memref<20x128xf32, #tpu.memory_space<vmem>>, %arg4: memref<16x128xf32, #tpu.memory_space<vmem>>, %arg5: memref<1x16x128xf32, #tpu.memory_space<vmem>>) attributes {dimension_semantics = [#tpu.dimension_semantics<parallel>, #tpu.dimension_semantics<parallel>], iteration_bounds = array<i64: 1, 2>, scalar_prefetch = 0 : i64, scratch_operands = 0 : i64, tpu.core_type = #tpu.core_type<tc>, window_params = [{transform_indices = @transform_0, window_bounds = array<i64: 1, 4, 16>}, {pipeline_mode = #tpu.pipeline_mode<synchronous>, transform_indices = @transform_1, window_bounds = array<i64: 20, 128>}, {transform_indices = @transform_2, window_bounds = array<i64: 16, 128>}, {transform_indices = @transform_3, window_bounds = array<i64: 1, 16, 128>}]} {
    %c0 = arith.constant 0 : index
    %c0_0 = arith.constant 0 : index
    %c0_1 = arith.constant 0 : index
    %0 = vector.load %arg2[%c0, %c0_0, %c0_1] : memref<1x4x16xi32, #tpu.memory_space<vmem>>, vector<1x4x16xi32>
    %1 = vector.shape_cast %0 : vector<1x4x16xi32> to vector<4x16xi32>
    %2 = vector.extract_strided_slice %1 {offsets = [0, 0], sizes = [1, 16], strides = [1, 1]} : vector<4x16xi32> to vector<1x16xi32>
    %3 = vector.extract_strided_slice %1 {offsets = [1, 0], sizes = [1, 16], strides = [1, 1]} : vector<4x16xi32> to vector<1x16xi32>
    %4 = vector.extract_strided_slice %1 {offsets = [2, 0], sizes = [1, 16], strides = [1, 1]} : vector<4x16xi32> to vector<1x16xi32>
    %5 = vector.extract_strided_slice %1 {offsets = [3, 0], sizes = [1, 16], strides = [1, 1]} : vector<4x16xi32> to vector<1x16xi32>
    %6 = tpu.iota {dimensions = array<i32: 0>} : vector<20x16xi32>
    %c5_i32 = arith.constant 5 : i32
    %7 = vector.broadcast %c5_i32 : i32 to vector<20x16xi32>
    %8 = arith.cmpi sge, %6, %7 : vector<20x16xi32>
    %c10_i32 = arith.constant 10 : i32
    %9 = vector.broadcast %c10_i32 : i32 to vector<20x16xi32>
    %10 = arith.cmpi sge, %6, %9 : vector<20x16xi32>
    %c15_i32 = arith.constant 15 : i32
    %11 = vector.broadcast %c15_i32 : i32 to vector<20x16xi32>
    %12 = arith.cmpi sge, %6, %11 : vector<20x16xi32>
    %13 = vector.shape_cast %3 : vector<1x16xi32> to vector<1x16xi32>
    %14 = vector.broadcast %13 : vector<1x16xi32> to vector<20x16xi32>
    %15 = vector.shape_cast %2 : vector<1x16xi32> to vector<1x16xi32>
    %16 = vector.broadcast %15 : vector<1x16xi32> to vector<20x16xi32>
    %17 = arith.select %8, %14, %16 : vector<20x16xi1>, vector<20x16xi32>
    %18 = vector.shape_cast %4 : vector<1x16xi32> to vector<1x16xi32>
    %19 = vector.broadcast %18 : vector<1x16xi32> to vector<20x16xi32>
    %20 = arith.select %10, %19, %17 : vector<20x16xi1>, vector<20x16xi32>
    %21 = vector.shape_cast %5 : vector<1x16xi32> to vector<1x16xi32>
    %22 = vector.broadcast %21 : vector<1x16xi32> to vector<20x16xi32>
    %23 = arith.select %12, %22, %20 : vector<20x16xi1>, vector<20x16xi32>
    %24 = arith.extui %8 : vector<20x16xi1> to vector<20x16xi32>
    %25 = arith.extui %10 : vector<20x16xi1> to vector<20x16xi32>
    %26 = arith.addi %24, %25 : vector<20x16xi32>
    %27 = arith.extui %12 : vector<20x16xi1> to vector<20x16xi32>
    %28 = arith.addi %26, %27 : vector<20x16xi32>
    %c5_i32_2 = arith.constant 5 : i32
    %29 = vector.broadcast %c5_i32_2 : i32 to vector<20x16xi32>
    %30 = arith.muli %28, %29 : vector<20x16xi32>
    %31 = arith.addi %23, %30 : vector<20x16xi32>
    %32 = arith.cmpi eq, %31, %6 : vector<20x16xi32>
    %33 = arith.extui %32 : vector<20x16xi1> to vector<20x16xi32>
    %34 = arith.sitofp %33 : vector<20x16xi32> to vector<20x16xf32>
    %c0_3 = arith.constant 0 : index
    %c0_4 = arith.constant 0 : index
    %35 = vector.load %arg3[%c0_3, %c0_4] : memref<20x128xf32, #tpu.memory_space<vmem>>, vector<20x128xf32>
    %cst = arith.constant dense<0.000000e+00> : vector<16x128xf32>
    %36 = tpu.matmul %34, %35, %cst {dimension_numbers = #tpu.dot_dimension_numbers<[0], [0], [1], [1], [0, 1, 1, 1], [], []>, precision = #tpu.contract_precision<fp32>} : vector<20x16xf32>, vector<20x128xf32>, vector<16x128xf32> -> vector<16x128xf32>
    %c0_5 = arith.constant 0 : index
    %c0_6 = arith.constant 0 : index
    %37 = vector.load %arg4[%c0_5, %c0_6] : memref<16x128xf32, #tpu.memory_space<vmem>>, vector<16x128xf32>
    %38 = arith.addf %36, %37 : vector<16x128xf32>
    %c0_7 = arith.constant 0 : index
    %c0_8 = arith.constant 0 : index
    %c0_9 = arith.constant 0 : index
    %39 = vector.load %arg5[%c0_7, %c0_8, %c0_9] : memref<1x16x128xf32, #tpu.memory_space<vmem>>, vector<1x16x128xf32>
    %40 = vector.shape_cast %39 : vector<1x16x128xf32> to vector<16x128xf32>
    %41 = vector.shape_cast %38 : vector<16x128xf32> to vector<1x16x128xf32>
    tpu.vector_store %arg5[%c0_7, %c0_8, %c0_9], %41 {strides = array<i32>} : memref<1x16x128xf32, #tpu.memory_space<vmem>>, vector<1x16x128xf32>,
    return
  }
  func.func @transform_0(%arg0: i32, %arg1: i32) -> (i32, i32, i32) {
    %c0_i32 = arith.constant 0 : i32
    %c0_i32_0 = arith.constant 0 : i32
    return %arg1, %c0_i32, %arg0 : i32, i32, i32
  }
  func.func @transform_1(%arg0: i32, %arg1: i32) -> (i32, i32) {
    %c0_i32 = arith.constant 0 : i32
    %c0_i32_0 = arith.constant 0 : i32
    %c0_i32_1 = arith.constant 0 : i32
    return %c0_i32, %c0_i32_0 : i32, i32
  }
  func.func @transform_2(%arg0: i32, %arg1: i32) -> (i32, i32) {
    %c0_i32 = arith.constant 0 : i32
    %c0_i32_0 = arith.constant 0 : i32
    return %arg0, %c0_i32 : i32, i32
  }
  func.func @transform_3(%arg0: i32, %arg1: i32) -> (i32, i32, i32) {
    %c0_i32 = arith.constant 0 : i32
    %c0_i32_0 = arith.constant 0 : i32
    return %arg1, %arg0, %c0_i32 : i32, i32, i32
  }
}

</mosaic_0001>

<bundles_post_ra>
// kernel: tpu_custom_call.1
= control target key start
LH: loop header
LB: loop body
LE: loop exit
PB: predicated region body
PF: predicated region fallthrough
CT: control target
= control target key end

     0   :  { %8 = vsyncpa [#allocation3], 0  ;;  %s1154_s0 = inlined_call_operand.hbm [shape: s32[2,4,16], index: 0, kind: input, shape index: {}]   ;;  %s1155_s1 = inlined_call_operand.hbm [shape: f32[20,128], index: 1, kind: input, shape index: {}]   ;;  %s1156_s2 = inlined_call_operand.hbm [shape: f32[16,128], index: 2, kind: input, shape index: {}]   ;;  %s1157_s3 = inlined_call_operand.hbm [shape: f32[2,16,128], index: 3, kind: output, shape index: {}]  }
   0x1   :  { %10 = vsyncpa [#allocation3 + $0x1], 0 }
   0x2   :  { %11 = vsyncpa [#allocation6], 0 }
   0x3   :  { %12 = vsyncpa [#allocation4], 0 }
   0x4   :  { %14 = vsyncpa [#allocation4 + $0x1], 0  ;;  %s1005_s12 = smov 0   ;;  %s1007_s13 = smov 0  }
   0x5   :  { %s1009_s14 = smov 0   ;;  %s1011_s15 = smov 0  }
   0x6   :  { %s1013_s16 = smov 0   ;;  %s1015_s17 = smov 0  }
   0x7 LB: > { %s682_s18 = sadd.s32 4294967295, %s975_s17   ;;  %p684_p0 = scmp.ge.s32.totalorder %s975_s17, 1  ;;  %s975_s17 = sphi %s1015_s17, %s20_s17   ;;  %s971_s16 = sphi %s1013_s16, %s1167_s16   ;;  %s967_s15 = sphi %s1011_s15, %s1166_s15   ;;  %s963_s14 = sphi %s1009_s14, %s1165_s14   ;;  %s959_s13 = sphi %s1007_s13, %s1164_s13   ;;  %s955_s12 = sphi %s1005_s12, %s1163_s12  }
   0x8   : > { %p1039_p1 = scmp.eq.s32.totalorder %s682_s18, 0  ;;  %p140_p2 = scmp.lt.s32.totalorder %s975_s17, 3 }
   0x9   : > { %s151_s22 = sshll.u32 %s1155_s1, 4  ;;  %s977_s24 = smov [#allocation5]   ;;  %s152_s22 = int_to_ptr.hbm [resolvable:$true] %s151_s22 }
   0xa   : > { %p1047_p3 = pnand %p684_p0, %p140_p2  ;;  %s153_s25 = sshll.u32 %s977_s24, 4  ;;  %s154_s25 = int_to_ptr.vmem [resolvable:$true] %s153_s25 }
   0xb   : > { %p687_p6 = scmp.ge.s32.totalorder %s975_s17, 2  ;;  %s168_s28 = sshll.u32 %s1156_s2, 4  ;;  %s169_s28 = int_to_ptr.hbm [resolvable:$true] %s168_s28 }
   0xc   : > { %p722_p4 = pneg %p1047_p3  ;;  %s978_s29 = smov 128  }
   0xd   : > { %s979_s30 = smov 8   ;;  %s980_s4 = smov [#allocation7]  }
   0xe   : > { %p723_p5 = pnand %p722_p4, %p1039_p1  ;;  %s170_s5 = sshll.u32 %s980_s4, 4  ;;  %s171_s5 = int_to_ptr.vmem [resolvable:$true] %s170_s5 }
   0xf   : > { %s29_s6 = sadd.s32 1, %s971_s16  ;;  %s683_s7 = sadd.s32 4294967294, %s975_s17  }
  0x10   : > { %725 = dma.hbm_to_vmem [thread:$0]  (!%p723_p5), %s152_s22, 384, %s154_s25, [#allocation6], %s978_s29, %s978_s29, %s979_s30  }
  0x11   : > { %728 = dma.hbm_to_vmem [thread:$0]  (!%p723_p5), %s169_s28, 256, %s171_s5, [#allocation6], %s978_s29, %s978_s29, %s979_s30  }
  0x12   : > { %p30_p7 = scmp.ge.s32.totalorder %s29_s6, 2  ;;  %s41_s8 = sadd.s32 1, %s963_s14 }
  0x13   : > { %p48_p8 = scmp.ne.s32.totalorder %s963_s14, %s959_s13  ;;  %p49_p9 = scmp.eq.s32.totalorder %s975_s17, 0 }
  0x14   : > { %s1169_s6 = smov (%p30_p7, %s29_s6), 0  ;;  %p54_p10 = scmp.ne.s32.totalorder %s959_s13, %s955_s12 }
  0x15   : > { %s36_s9 = ssub.s32 %s971_s16, %s1169_s6  ;;  %p127_p11 = scmp.eq.s32.totalorder %s682_s18, 1 }
  0x16   : > { %p39_p12 = scmp.eq.s32.totalorder %s36_s9, 0  ;;  %p1075_p13 = por %p1039_p1, %p54_p10 }
  0x17   : > { %p1079_p0 = por %p127_p11, %p48_p8  ;;  %p133_p2 = scmp.eq.s32.totalorder %s683_s7, 1 }
  0x18   : > { %s1084_s20 = scalar_select %p39_p12, %s963_s14, %s41_s8  }
  0x19   : > { %p50_p4 = por %p49_p9, %p48_p8  ;;  %p1086_p5 = por %p133_p2, %p54_p10 }
  0x1a   : > { %s184_s22 = sand.u32 1, %s963_s14   ;;  %s689_s18 = sshll.u32 %s971_s16, 2 }
  0x1b   : > { %p739_p7 = scmp.lt.s32.totalorder %s975_s17, 2  ;;  %s688_s24 = sshll.u32 %s184_s22, 2 }
  0x1c   : > { %s193_s27 = scalar_lea.hbm %s1154_s0, %s689_s18  ;;  %s188_s29 = scalar_lea.vmem [#allocation2], %s688_s24 }
  0x1d   : > { %s195_s28 = sshll.u32 %s193_s27, 4  ;;  %s197_s30 = sshll.u32 %s188_s29, 4  ;;  %s196_s28 = int_to_ptr.hbm [resolvable:$true] %s195_s28  ;;  %s198_s30 = int_to_ptr.vmem [resolvable:$true] %s197_s30 }
  0x1e   : > { %p730_p11 = pnand %p739_p7, %p50_p4  ;;  %s185_s4 = scalar_lea.sflag [#allocation3], %s184_s22 }
  0x1f   : > { %206 = sbr.rel (%p1047_p3) target bundleno = 395 (0x18b), region = 32  ;;  %s1099_s5 = sand.u32 (!%p1047_p3), 1, %s959_s13  }
  0x20   : > { %732 = dma.hbm_to_vmem [thread:$0]  (!%p730_p11), %s196_s28, 64, %s198_s30, %s185_s4  }
  0x21   : > { %s691_s7 = sshll.u32 (!%p1047_p3), %s1099_s5, 2  ;;  %s209_s8 = scalar_lea.sflag (!%p1047_p3), [#allocation3], %s1099_s5 }
  0x22   : > { %s212_s9 = scalar_lea.vmem (!%p1047_p3), [#allocation2], %s691_s7 }
  0x24   : > { %942 = dma.done.wait (%p1075_p13), %s209_s8, 64  }
  0x25   : > { %944 = vsyncadd (%p1075_p13), %s209_s8, 4294967232 }
  0x26   : > { %946 = dma.done.wait (%p1039_p1), [#allocation6], 640  }
  0x27   : > { %948 = vsyncadd (%p1039_p1), [#allocation6], 4294966656  ;;  %v249_v0 = vlaneseq  ;;  %v981_v3 = vmov 0   ;;  %vm349_vm3 = vcmask 1043456   ;;  %v248_v6 = vld [vmem:[%s212_s9] sm:$0xf] }
  0x28   : > { %v307_v9 = vld [vmem:[#allocation5 + $0x10] sm:$0xf]  ;;  %v262_v10 = vperm.slane %v248_v6, 1  ;;  %v263_v11 = vperm.slane %v248_v6, 0  ;;  %v267_v12 = vperm.slane %v248_v6, 2  ;;  %v271_v13 = vperm.slane %v248_v6, 3 }
  0x29   : > { %v250_v1 = vshrl.u32 %v249_v0, 7  ;;  %v351_v15 = vsel %vm349_vm3, %v307_v9, 0  ;;  %v982_v24 = vmov 0.0   ;;  %v306_v34 = vld [vmem:[#allocation5 + $0x8] sm:$0xff]  ;;  %v305_v36 = vld [vmem:[#allocation5] sm:$0xff]  ;;  %vm342_vm7 = vcmask 162816  }
  0x2a   : > { %v366_v18 = vand.u32 4294901760, %v351_v15  ;;  %v295_v32 = vadd.s32 15, %v271_v13  ;;  %v368_v35 = vand.u32 4294901760, %v306_v34  ;;  %v370_v38 = vand.u32 4294901760, %v305_v36  ;;  %v308_v61 = vld [vmem:[#allocation7] sm:$0xff]  ;;  %s694_s19 = sshll.u32 %s1099_s5, 4 }
  0x2b   : > { %vm253_vm0 = vcmp.ge.s32.totalorder %v250_v1, 5  ;;  %v251_v2 = vadd.s32 8, %v250_v1  ;;  %v252_v31 = vadd.s32 16, %v250_v1  ;;  %s703_s23 = sshll.u32 %s967_s15, 4  ;;  %s245_s10 = scalar_lea.vmem [#allocation8], %s694_s19 }
  0x2c   : > { %v275_v4 = vsel %vm253_vm0, 1, %v981_v3  ;;  %v264_v16 = vsel %vm253_vm0, %v262_v10, %v263_v11  ;;  %v403_v22 = vsub.f32 %v351_v15, %v366_v18  ;;  %367 = vmatpush.msra.mxu0 %v366_v18  ;;  %704 = vmatpush.msra.mxu2 %v366_v18  ;;  %v409_v37 = vsub.f32 %v306_v34, %v368_v35  ;;  %s572_s24 = scalar_lea.hbm %s1157_s3, %s703_s23  ;;  %s573_s25 = sshll.u32 %s245_s10, 4  ;;  %s574_s25 = int_to_ptr.vmem [resolvable:$true] %s573_s25 }
  0x2d   : > { %v290_v5 = vmul.u32 5, %v275_v4  ;;  %vm257_vm1 = vcmp.ge.s32.totalorder %v251_v2, 10  ;;  %vm260_vm2 = vcmp.ge.s32.totalorder %v251_v2, 15  ;;  %vm298_vm6 = vcmp.eq.s32.totalorder %v295_v32, %v252_v31  ;;  %s575_s26 = sshll.u32 %s572_s24, 4  ;;  %s559_s15 = scalar_lea.sflag [#allocation4], %s1099_s5  ;;  %s576_s26 = int_to_ptr.hbm [resolvable:$true] %s575_s26 }
  0x2e   : > { %v279_v7 = vsel %vm257_vm1, 1, %v981_v3  ;;  %v285_v8 = vsel %vm260_vm2, 1, %v981_v3  ;;  %v269_v17 = vsel %vm257_vm1, %v267_v12, %v262_v10  ;;  %v404_v26 = vand.u32 4294901760, %v403_v22  ;;  %369 = vmatpush.msra.mxu0 %v368_v35  ;;  %705 = vmatpush.msra.mxu2 %v368_v35  ;;  %v309_v3 = vld [vmem:[#allocation7 + $0x8] sm:$0xff]  ;;  %s903_s27 = sshra.s32 %s576_s26, 4  ;;  %s909_s4 = scalar_lea.hbm %s1157_s3, 32  ;;  %s904_s27 = int_to_ptr.hbm [resolvable:$true] %s903_s27 }
  0x2f   : > { %v282_v14 = vadd.s32 1, %v279_v7  ;;  %v293_v19 = vadd.s32 %v290_v5, %v264_v16  ;;  %v273_v21 = vsel %vm260_vm2, %v271_v13, %v269_v17  ;;  %v697_v33 = vsel %vm298_vm6, 1.0, %v982_v24  ;;  %s905_s28 = scalar_lea.hbm %s904_s27, 16  ;;  %p910_p9 = scmp.lt.s32.totalorder %s904_s27, %s1157_s3 }
  0x30   : > { %v405_v28 = vsub.f32 %v403_v22, %v404_v26  ;;  %v410_v39 = vand.u32 4294901760, %v409_v37  ;;  %v415_v40 = vsub.f32 %v305_v36, %v370_v38  ;;  %371 = vmatpush.msra.mxu0 %v370_v38  ;;  %706 = vmatpush.msra.mxu2 %v370_v38  ;;  %p906_p1 = scmp.ne.s32.totalorder %s904_s27, %s905_s28  ;;  %p911_p10 = scmp.lt.s32.totalorder %s909_s4, %s905_s28 }
  0x31   : > { %v288_v20 = vadd.s32 %v285_v8, %v282_v14  ;;  %vm296_vm4 = vcmp.eq.s32.totalorder %v293_v19, %v250_v1 }
  0x32   : > { %v695_v25 = vsel %vm296_vm4, 1.0, %v982_v24  ;;  %v406_v29 = vand.u32 4294901760, %v405_v28  ;;  %510 = vmatpush.msrb.mxu0 %v404_v26  ;;  %444 = vmatpush.msrb.mxu2 %v403_v22  ;;  %v411_v41 = vsub.f32 %v409_v37, %v410_v39  ;;  %v416_v42 = vand.u32 4294901760, %v415_v40  ;;  %p907_p3 = pnand %p906_p1, %p1079_p0  ;;  %p912_p12 = por %p911_p10, %p910_p9 }
  0x33   : > { %v291_v23 = vmul.u32 5, %v288_v20  ;;  %310 = vxpose.xlu0.b32.start [1/3] (short) (narrow) %v695_v25, 16 }
  0x34   : > { %407 = vmatpush.msra.mxu1 %v406_v29  ;;  %707 = vmatpush.msra.mxu3 %v406_v29  ;;  %v412_v43 = vand.u32 4294901760, %v411_v41  ;;  %v417_v44 = vsub.f32 %v415_v40, %v416_v42  ;;  %p908_p8 = pneg %p907_p3 }
  0x35   : > { %v294_v27 = vadd.s32 %v291_v23, %v273_v21  ;;  %514 = vmatpush.msrb.mxu0 %v410_v39  ;;  %447 = vmatpush.msrb.mxu2 %v409_v37 }
  0x36   : > { %413 = vmatpush.msra.mxu1 %v412_v43  ;;  %v418_v45 = vand.u32 4294901760, %v417_v44  ;;  %708 = vmatpush.msra.mxu3 %v412_v43  ;;  %p913_p13 = pnand %p912_p12, %p908_p8 }
  0x37   : > { %vm297_vm5 = vcmp.eq.s32.totalorder %v294_v27, %v251_v2  ;;  %518 = vmatpush.msrb.mxu0 %v416_v42  ;;  %450 = vmatpush.msrb.mxu2 %v415_v40 }
  0x38   : > { %v696_v30 = vsel %vm297_vm5, 1.0, %v982_v24  ;;  %419 = vmatpush.msra.mxu1 %v418_v45  ;;  %709 = vmatpush.msra.mxu3 %v418_v45 }
  0x3a   : > { %542 = vmatpush.msrb.mxu1 %v366_v18  ;;  %476 = vmatpush.msrb.mxu3 %v366_v18 }
  0x3b   : > { %311 = vxpose.xlu0.b32.cont [2/3] (short) (narrow) %v696_v30, 16 }
  0x3c   : > { %544 = vmatpush.msrb.mxu1 %v368_v35  ;;  %478 = vmatpush.msrb.mxu3 %v368_v35 }
  0x3e   : > { %546 = vmatpush.msrb.mxu1 %v370_v38  ;;  %480 = vmatpush.msrb.mxu3 %v370_v38 }
  0x43   : > { %312 = vxpose.xlu0.b32.end [3/3] (short) (narrow) %v697_v33, 16 }
  0xd7   : > { %v326_v46 = vpop.trf.xlu0 }
  0xd8   : > { %v344_v47 = vsel %vm342_vm7, %v326_v46, 0 }
  0xd9   : > { %v372_v48 = vand.u32 4294901760, %v344_v47 }
  0xdb   : > { %v373_v49 = vsub.f32 %v344_v47, %v372_v48  ;;  %421 = vmatmul.f32.vlgmr.msra.gmra.mxu1 %v372_v48 }
  0xdd   : > { %v374_v50 = vand.u32 4294901760, %v373_v49 }
  0xdf   : > { %v327_v51 = vpop.trf.xlu0  ;;  %v375_v52 = vsub.f32 %v373_v49, %v374_v50 }
  0xe0   : > { %v347_v53 = vsel %vm342_vm7, %v327_v51, 0 }
  0xe1   : > { %v380_v54 = vand.u32 4294901760, %v347_v53  ;;  %v376_v55 = vand.u32 4294901760, %v375_v52 }
  0xe3   : > { %v381_v56 = vsub.f32 %v347_v53, %v380_v54  ;;  %377 = vmatmul.f32.vlgmr.msra.gmra.mxu0 %v376_v55  ;;  %425 = vmatmul.f32.vlgmr.msra.gmra.mxu3 %v380_v54 }
  0xe4   : > { %548 = vmatmul.f32.vlgmr.msrb.gmra.mxu1 %v372_v48 }
  0xe5   : > { %v382_v57 = vand.u32 4294901760, %v381_v56 }
  0xe7   : > { %v383_v58 = vsub.f32 %v381_v56, %v382_v57 }
  0xe9   : > { %v384_v59 = vand.u32 4294901760, %v383_v58 }
  0xeb   : > { %385 = vmatmul.f32.vlgmr.msra.gmra.mxu2 %v384_v59  ;;  %484 = vmatmul.f32.vlgmr.msrb.gmra.mxu3 %v374_v50 }
  0xec   : > { %520 = vmatmul.f32.vlgmr.msrb.gmra.mxu0 %v372_v48  ;;  %552 = vmatmul.f32.gmra.mxu1 %v380_v54 }
  0xf3   : > { %453 = vmatmul.f32.vlgmr.msrb.gmra.mxu2 %v373_v49  ;;  %490 = vmatmul.f32.gmra.mxu3 %v382_v57 }
  0xf4   : > { %524 = vmatmul.f32.gmra.mxu0 %v380_v54 }
  0xfb   : > { %458 = vmatmul.f32.gmra.mxu2 %v381_v56 }
 0x158   : > { %v422_v0 = vpop.f32.mrf.mxu1 }
 0x160   : > { %v378_v62 = vpop.f32.mrf.mxu0 }
 0x161   : > { %v379_v1 = vadd.f32 %v378_v62, %v308_v61  ;;  %v549_v10 = vpop.f32.mrf.mxu1 }
 0x163   : > { %v423_v2 = vadd.f32 %v422_v0, %v379_v1 }
 0x166   : > { %v426_v60 = vpop.f32.mrf.mxu3 }
 0x169   : > { %v521_v7 = vpop.f32.mrf.mxu0  ;;  %v553_v20 = vpop.f32.mrf.mxu1 }
 0x16e   : > { %v386_v63 = vpop.f32.mrf.mxu2  ;;  %v485_v4 = vpop.f32.mrf.mxu3 }
 0x16f   : > { %v387_v8 = vadd.f32 %v386_v63, %v309_v3 }
 0x171   : > { %v427_v13 = vadd.f32 %v426_v60, %v387_v8  ;;  %v525_v18 = vpop.f32.mrf.mxu0 }
 0x176   : > { %v454_v5 = vpop.f32.mrf.mxu2  ;;  %v491_v16 = vpop.f32.mrf.mxu3 }
 0x177   : > { %v455_v6 = vadd.f32 %v454_v5, %v423_v2 }
 0x179   : > { %v486_v9 = vadd.f32 %v485_v4, %v455_v6 }
 0x17b   : > { %v522_v11 = vadd.f32 %v521_v7, %v486_v9 }
 0x17d   : > { %v550_v12 = vadd.f32 %v549_v10, %v522_v11 }
 0x17e   : > { %v459_v14 = vpop.f32.mrf.mxu2 }
 0x17f   : > { %556 = vst [vmem:[%s245_s10] sm:$0xff] %v550_v12  ;;  %v460_v15 = vadd.f32 %v459_v14, %v427_v13 }
 0x181   : > { %v492_v17 = vadd.f32 %v491_v16, %v460_v15 }
 0x183   : > { %v526_v19 = vadd.f32 %v525_v18, %v492_v17 }
 0x185   : > { %v554_v21 = vadd.f32 %v553_v20, %v526_v19 }
 0x187   : > { %557 = vst [vmem:[%s245_s10 + $0x8] sm:$0xff] %v554_v21 }
 0x188   : > { %916 = shalt.err (!%p913_p13)
}
 0x189   : > { %s983_s5 = smov 128   ;;  %s984_s9 = smov 8  }
 0x18a   : > { %720 = dma.vmem_to_hbm [thread:$0]  (%p1079_p0), %s574_s25, 256, %s576_s26, %s559_s15, %s983_s5, %s983_s5, %s984_s9  }
 0x18b PF: > { %s590_s19 = sand.u32 1, %s955_s12   ;;  %p734_p2 = pnand %p687_p6, %p1086_p5 }
 0x18c   : > { %s591_s23 = scalar_lea.sflag [#allocation4], %s590_s19 }
 0x18d   : > { %p735_p4 = pneg %p734_p2 }
 0x18f   : > { %950 = dma.done.wait (%p735_p4), %s591_s23, 256  }
 0x190   : > { %952 = vsyncadd (%p735_p4), %s591_s23, 4294967040  ;;  %s20_s17 = sadd.s32 1, %s975_s17   ;;  %s1163_s12 = smov %s959_s13 }
 0x191   : > { %p17_p7 = scmp.ge.s32.totalorder %s20_s17, 4   ;;  %s1164_s13 = smov %s963_s14 }
 0x192   : > { %s1165_s14 = smov %s1084_s20  ;;  %s1166_s15 = smov %s971_s16 }
 0x193   : > { %s1167_s16 = smov %s1169_s6  ;;  %19 = sbr.rel (!%p17_p7) target bundleno = 7 (0x7), region = 86 }
 0x198   :  { %597 = vsyncpa [#allocation3], 1 }
 0x199   :  { %599 = vsyncpa [#allocation3 + $0x1], 1 }
 0x19a   :  { %600 = vsyncpa [#allocation6], 1 }
 0x19b   :  { %601 = vsyncpa [#allocation4], 1 }
 0x19c   :  { %603 = vsyncpa [#allocation4 + $0x1], 1 }

</bundles_post_ra>
